<compile_context>
chip_gen: v6e
topology: v6e:2x2x1
jax: 0.10.0
libtpu: 0.0.40
codegen_flags: <defaults>
</compile_context>

<pallas_src>
import jax
import jax.numpy as jnp
from jax import lax
from jax.experimental import pallas as pl
from jax.experimental.pallas import tpu as pltpu

LEAKY_SLOPE = 0.01  # nn.LeakyReLU default negative_slope


def _round_up(x, m):
    return ((x + m - 1) // m) * m


def lstm_concept_kernel(x_ref,      # (seq*bsp, inp)   time-major, batch/feature padded input
                        wp_ref,     # (inp, hidp)      proj weight^T, row+col zero-padded
                        bp_ref,     # (1, hidp)        proj bias, col zero-padded
                        wih_ref,    # (hidp, 4*hid)    LSTM W_ih^T, rows zero-padded, g cols *2
                        whh_ref,    # (hid, 4*hid)     LSTM W_hh^T, g cols *2
                        bg_ref,     # (1, 4*hid)       (b_ih+b_hh+y_emb@W_ih^T), g cols *2
                        wpred_ref,  # (hid, outp)      predictor weight^T, col zero-padded
                        bpred_ref,  # (1, outp)        predictor bias, col zero-padded
                        out_ref):   # (bsp, outp)
    bsp = out_ref.shape[0]
    total = x_ref.shape[0]
    seq = total // bsp
    hid = whh_ref.shape[0]          # true (unpadded) hidden size

    # ---- hoisted input path: batched over all (seq*bsp) rows, runs once ----
    p = jnp.dot(x_ref[...], wp_ref[...],
                preferred_element_type=jnp.float32) + bp_ref[...]     # (seq*bsp, hidp)
    p = jnp.maximum(p, LEAKY_SLOPE * p)                               # LeakyReLU
    # input-gate contribution for every timestep; y_emb and both LSTM biases
    # are already folded into bg_ref (with the g-gate prescale applied).
    xg = jnp.dot(p, wih_ref[...],
                 preferred_element_type=jnp.float32) + bg_ref[...]    # (seq*bsp, 4*hid)

    whh = whh_ref[...]

    # Static lane mask selecting the `g` (cell candidate) gate block.
    # PyTorch gate order is [i, f, g, o]: lanes [2*hid, 3*hid).
    lane = lax.broadcasted_iota(jnp.int32, (bsp, 4 * hid), 1)
    g_mask = (lane >= 2 * hid) & (lane < 3 * hid)

    def activate(gates):
        # One EUP push per step: g columns arrive pre-scaled by 2, so
        # 2*sigmoid(gates_g) - 1 == tanh(original g); other gates are sigmoid.
        s = jax.nn.sigmoid(gates)
        return jnp.where(g_mask, 2.0 * s - 1.0, s)

    # ---- t = 0: h = c = 0, so gates == xg[0:bsp]; no h@W_hh, no f*c ----
    act0 = activate(xg[0:bsp, :])
    i0 = act0[:, 0 * hid:1 * hid]
    g0 = act0[:, 2 * hid:3 * hid]
    o0 = act0[:, 3 * hid:4 * hid]
    c = i0 * g0
    h = o0 * jnp.tanh(c)

    # ---- fully unrolled recurrence for the remaining steps ----
    for t in range(1, seq):
        gates = xg[t * bsp:(t + 1) * bsp, :] + jnp.dot(
            h, whh, preferred_element_type=jnp.float32)               # (bsp, 4*hid)
        act = activate(gates)
        i_g = act[:, 0 * hid:1 * hid]
        f_g = act[:, 1 * hid:2 * hid]
        g_g = act[:, 2 * hid:3 * hid]
        o_g = act[:, 3 * hid:4 * hid]
        c = f_g * c + i_g * g_g
        h = o_g * jnp.tanh(c)

    # predictor: h_final @ Wpred + bpred  (lane-dense padded output store)
    out = jnp.dot(h, wpred_ref[...],
                  preferred_element_type=jnp.float32) + bpred_ref[...]
    out_ref[...] = out.astype(out_ref.dtype)


def init_params(key, in_feat, hid, dtype=jnp.float32):
    ks = jax.random.split(key, 8)
    scale = 0.1
    params = {
        "y_emb": jax.random.normal(ks[0], (1, 1, hid), dtype),                 # nn.Parameter randn
        "wp":    (scale * jax.random.normal(ks[1], (in_feat, hid), dtype)),    # proj Linear (in, out)
        "bp":    (scale * jax.random.normal(ks[2], (1, hid), dtype)),
        "wih":   (scale * jax.random.normal(ks[3], (hid, 4 * hid), dtype)),    # LSTM W_ih^T
        "whh":   (scale * jax.random.normal(ks[4], (hid, 4 * hid), dtype)),    # LSTM W_hh^T
        "b_ih":  (scale * jax.random.normal(ks[5], (1, 4 * hid), dtype)),
        "b_hh":  (scale * jax.random.normal(ks[6], (1, 4 * hid), dtype)),
        "wpred": (scale * jax.random.normal(ks[7], (hid, in_feat), dtype)),    # predictor W^T
        "bpred": jnp.zeros((1, in_feat), dtype),
        "zero":  jnp.ones((1,), dtype),  # unused in forward (parity with module)
    }
    return params


def model_forward(x, params):
    """x: (bs, seq, in_feat)  ->  (bs, in_feat)"""
    bs, seq, in_feat = x.shape
    hid = params["wp"].shape[1]

    bsp = _round_up(max(bs, 8), 8)       # pad batch to sublane multiple (>= 8)
    inp = _round_up(in_feat, 128)        # lane-dense K dim for the proj matmul
    outp = _round_up(in_feat, 128)       # lane-dense output store
    hidp = _round_up(hid, 128)           # lane-dense intermediate p / xg contraction

    # time-major + zero-pad batch/feature, then flatten (seq, bsp) -> rows.
    x_tm = jnp.transpose(x, (1, 0, 2))                               # (seq, bs, in_feat)
    x_tm = jnp.pad(x_tm, ((0, 0), (0, bsp - bs), (0, inp - in_feat)))
    x2 = x_tm.reshape(seq * bsp, inp)

    # Pre-scale the g-gate columns by 2 (tanh(x) = 2*sigmoid(2x) - 1 rewrite):
    # one sigmoid EUP push per recurrence step instead of sigmoid + tanh.
    gscale = jnp.concatenate(
        [jnp.ones((1, 2 * hid), x.dtype),
         jnp.full((1, hid), 2.0, x.dtype),
         jnp.ones((1, hid), x.dtype)], axis=1)                        # (1, 4*hid)

    wih_s = params["wih"] * gscale                                    # (hid, 4*hid)
    whh_s = params["whh"] * gscale                                    # (hid, 4*hid)
    yemb = params["y_emb"].reshape(1, hid)
    # Fold y_emb through W_ih and merge the two LSTM biases, then prescale:
    # (leaky + y_emb) @ W_ih + b_ih + b_hh  ==  leaky @ W_ih + bg.
    bg = (params["b_ih"] + params["b_hh"] + yemb @ params["wih"]) * gscale  # (1, 4*hid)

    # Lane-dense padding for the hoisted input path (zero rows/cols: exact).
    wp = jnp.pad(params["wp"], ((0, inp - in_feat), (0, hidp - hid)))  # (inp, hidp)
    bp = jnp.pad(params["bp"], ((0, 0), (0, hidp - hid)))              # (1, hidp)
    wih_s = jnp.pad(wih_s, ((0, hidp - hid), (0, 0)))                  # (hidp, 4*hid)

    wpred = jnp.pad(params["wpred"], ((0, 0), (0, outp - in_feat)))
    bpred = jnp.pad(params["bpred"], ((0, 0), (0, outp - in_feat)))

    vmem = pl.BlockSpec(memory_space=pltpu.MemorySpace.VMEM)
    out = pl.pallas_call(
        lstm_concept_kernel,
        out_shape=jax.ShapeDtypeStruct((bsp, outp), x.dtype),
        in_specs=[vmem] * 8,
        out_specs=vmem,
    )(x2, wp, bp, wih_s, whh_s, bg, wpred, bpred)
    return out[:bs, :in_feat]


def reference_forward(x, params):
    """Pure-JAX reference mirroring the PyTorch forward exactly."""
    hid = params["wp"].shape[1]
    p = x @ params["wp"] + params["bp"]
    p = jnp.where(p > 0, p, LEAKY_SLOPE * p) + params["y_emb"]        # (bs, seq, hid)

    def cell(carry, x_t):
        h, c = carry
        gates = (x_t @ params["wih"] + h @ params["whh"]
                 + (params["b_ih"] + params["b_hh"])[0])
        i_g = jax.nn.sigmoid(gates[:, 0 * hid:1 * hid])
        f_g = jax.nn.sigmoid(gates[:, 1 * hid:2 * hid])
        g_g = jnp.tanh(gates[:, 2 * hid:3 * hid])
        o_g = jax.nn.sigmoid(gates[:, 3 * hid:4 * hid])
        c = f_g * c + i_g * g_g
        h = o_g * jnp.tanh(c)
        return (h, c), None

    bs = x.shape[0]
    h0 = jnp.zeros((bs, hid), jnp.float32)
    (h_final, _), _ = lax.scan(cell, (h0, h0), jnp.transpose(p, (1, 0, 2)))
    return h_final @ params["wpred"] + params["bpred"]


if __name__ == "__main__":
    # Small shapes consistent with the module's label_num == 1 branch.
    bs, seq = 2, 8
    in_dim, concept_bias, hid_dim = 12, 4, 32
    in_feat = in_dim + concept_bias

    key = jax.random.PRNGKey(0)
    k_x, k_p = jax.random.split(key)
    x = jax.random.normal(k_x, (bs, seq, in_feat), jnp.float32)
    params = init_params(k_p, in_feat, hid_dim)

    out = jax.block_until_ready(model_forward(x, params))
    ref = jax.block_until_ready(reference_forward(x, params))

    assert out.shape == (bs, in_feat)
    assert jnp.allclose(out, ref, atol=1e-4, rtol=1e-4), (out, ref)
    print("KERNEL_OK")
</pallas_src>

<mosaic_0001>
module attributes {stable_mosaic.version = 11 : i64} {
  func.func @lstm_concept_kernel(%arg0: memref<64x128xf32, #tpu.memory_space<vmem>>, %arg1: memref<128x128xf32, #tpu.memory_space<vmem>>, %arg2: memref<1x128xf32, #tpu.memory_space<vmem>>, %arg3: memref<128x128xf32, #tpu.memory_space<vmem>>, %arg4: memref<32x128xf32, #tpu.memory_space<vmem>>, %arg5: memref<1x128xf32, #tpu.memory_space<vmem>>, %arg6: memref<32x128xf32, #tpu.memory_space<vmem>>, %arg7: memref<1x128xf32, #tpu.memory_space<vmem>>, %arg8: memref<8x128xf32, #tpu.memory_space<vmem>>) attributes {dimension_semantics = [], scalar_prefetch = 0 : i64, scratch_operands = 0 : i64, tpu.core_type = #tpu.core_type<tc>} {
    %c0 = arith.constant 0 : index
    %c0_0 = arith.constant 0 : index
    %0 = vector.load %arg0[%c0, %c0_0] : memref<64x128xf32, #tpu.memory_space<vmem>>, vector<64x128xf32>
    %c0_1 = arith.constant 0 : index
    %c0_2 = arith.constant 0 : index
    %1 = vector.load %arg1[%c0_1, %c0_2] : memref<128x128xf32, #tpu.memory_space<vmem>>, vector<128x128xf32>
    %cst = arith.constant dense<0.000000e+00> : vector<64x128xf32>
    %2 = tpu.matmul %0, %1, %cst {dimension_numbers = #tpu.dot_dimension_numbers<[1], [0], [0], [1], [0, 0, 1, 1], [], []>} : vector<64x128xf32>, vector<128x128xf32>, vector<64x128xf32> -> vector<64x128xf32>
    %c0_3 = arith.constant 0 : index
    %c0_4 = arith.constant 0 : index
    %3 = vector.load %arg2[%c0_3, %c0_4] : memref<1x128xf32, #tpu.memory_space<vmem>>, vector<1x128xf32>
    %4 = vector.broadcast %3 : vector<1x128xf32> to vector<64x128xf32>
    %5 = arith.addf %2, %4 : vector<64x128xf32>
    %cst_5 = arith.constant 0.00999999977 : f32
    %6 = vector.broadcast %cst_5 : f32 to vector<64x128xf32>
    %7 = arith.mulf %6, %5 : vector<64x128xf32>
    %8 = arith.maximumf %5, %7 : vector<64x128xf32>
    %c0_6 = arith.constant 0 : index
    %c0_7 = arith.constant 0 : index
    %9 = vector.load %arg3[%c0_6, %c0_7] : memref<128x128xf32, #tpu.memory_space<vmem>>, vector<128x128xf32>
    %cst_8 = arith.constant dense<0.000000e+00> : vector<64x128xf32>
    %10 = tpu.matmul %8, %9, %cst_8 {dimension_numbers = #tpu.dot_dimension_numbers<[1], [0], [0], [1], [0, 0, 1, 1], [], []>} : vector<64x128xf32>, vector<128x128xf32>, vector<64x128xf32> -> vector<64x128xf32>
    %c0_9 = arith.constant 0 : index
    %c0_10 = arith.constant 0 : index
    %11 = vector.load %arg5[%c0_9, %c0_10] : memref<1x128xf32, #tpu.memory_space<vmem>>, vector<1x128xf32>
    %12 = vector.broadcast %11 : vector<1x128xf32> to vector<64x128xf32>
    %13 = arith.addf %10, %12 : vector<64x128xf32>
    %c0_11 = arith.constant 0 : index
    %c0_12 = arith.constant 0 : index
    %14 = vector.load %arg4[%c0_11, %c0_12] : memref<32x128xf32, #tpu.memory_space<vmem>>, vector<32x128xf32>
    %15 = tpu.iota {dimensions = array<i32: 1>} : vector<8x128xi32>
    %c64_i32 = arith.constant 64 : i32
    %16 = vector.broadcast %c64_i32 : i32 to vector<8x128xi32>
    %17 = arith.cmpi sge, %15, %16 : vector<8x128xi32>
    %c96_i32 = arith.constant 96 : i32
    %18 = vector.broadcast %c96_i32 : i32 to vector<8x128xi32>
    %19 = arith.cmpi slt, %15, %18 : vector<8x128xi32>
    %20 = arith.andi %17, %19 : vector<8x128xi1>
    %21 = vector.extract_strided_slice %13 {offsets = [0, 0], sizes = [8, 128], strides = [1, 1]} : vector<64x128xf32> to vector<8x128xf32>
    %22 = arith.negf %21 : vector<8x128xf32>
    %23 = math.exp %22 : vector<8x128xf32>
    %cst_13 = arith.constant 1.000000e+00 : f32
    %24 = vector.broadcast %cst_13 : f32 to vector<8x128xf32>
    %25 = arith.addf %24, %23 : vector<8x128xf32>
    %26 = arith.divf %24, %25 : vector<8x128xf32>
    %cst_14 = arith.constant 2.000000e+00 : f32
    %27 = vector.broadcast %cst_14 : f32 to vector<8x128xf32>
    %28 = arith.mulf %27, %26 : vector<8x128xf32>
    %cst_15 = arith.constant 1.000000e+00 : f32
    %29 = vector.broadcast %cst_15 : f32 to vector<8x128xf32>
    %30 = arith.subf %28, %29 : vector<8x128xf32>
    %31 = arith.select %20, %30, %26 : vector<8x128xi1>, vector<8x128xf32>
    %32 = vector.extract_strided_slice %31 {offsets = [0, 0], sizes = [8, 32], strides = [1, 1]} : vector<8x128xf32> to vector<8x32xf32>
    %33 = vector.extract_strided_slice %31 {offsets = [0, 64], sizes = [8, 32], strides = [1, 1]} : vector<8x128xf32> to vector<8x32xf32>
    %34 = vector.extract_strided_slice %31 {offsets = [0, 96], sizes = [8, 32], strides = [1, 1]} : vector<8x128xf32> to vector<8x32xf32>
    %35 = arith.mulf %32, %33 : vector<8x32xf32>
    %36 = math.tanh %35 : vector<8x32xf32>
    %37 = arith.mulf %34, %36 : vector<8x32xf32>
    %38 = vector.extract_strided_slice %13 {offsets = [8, 0], sizes = [8, 128], strides = [1, 1]} : vector<64x128xf32> to vector<8x128xf32>
    %cst_16 = arith.constant dense<0.000000e+00> : vector<8x128xf32>
    %39 = tpu.matmul %37, %14, %cst_16 {dimension_numbers = #tpu.dot_dimension_numbers<[1], [0], [0], [1], [0, 0, 1, 1], [], []>} : vector<8x32xf32>, vector<32x128xf32>, vector<8x128xf32> -> vector<8x128xf32>
    %40 = arith.addf %38, %39 : vector<8x128xf32>
    %41 = arith.negf %40 : vector<8x128xf32>
    %42 = math.exp %41 : vector<8x128xf32>
    %cst_17 = arith.constant 1.000000e+00 : f32
    %43 = vector.broadcast %cst_17 : f32 to vector<8x128xf32>
    %44 = arith.addf %43, %42 : vector<8x128xf32>
    %45 = arith.divf %43, %44 : vector<8x128xf32>
    %cst_18 = arith.constant 2.000000e+00 : f32
    %46 = vector.broadcast %cst_18 : f32 to vector<8x128xf32>
    %47 = arith.mulf %46, %45 : vector<8x128xf32>
    %cst_19 = arith.constant 1.000000e+00 : f32
    %48 = vector.broadcast %cst_19 : f32 to vector<8x128xf32>
    %49 = arith.subf %47, %48 : vector<8x128xf32>
    %50 = arith.select %20, %49, %45 : vector<8x128xi1>, vector<8x128xf32>
    %51 = vector.extract_strided_slice %50 {offsets = [0, 0], sizes = [8, 32], strides = [1, 1]} : vector<8x128xf32> to vector<8x32xf32>
    %52 = vector.extract_strided_slice %50 {offsets = [0, 32], sizes = [8, 32], strides = [1, 1]} : vector<8x128xf32> to vector<8x32xf32>
    %53 = vector.extract_strided_slice %50 {offsets = [0, 64], sizes = [8, 32], strides = [1, 1]} : vector<8x128xf32> to vector<8x32xf32>
    %54 = vector.extract_strided_slice %50 {offsets = [0, 96], sizes = [8, 32], strides = [1, 1]} : vector<8x128xf32> to vector<8x32xf32>
    %55 = arith.mulf %52, %35 : vector<8x32xf32>
    %56 = arith.mulf %51, %53 : vector<8x32xf32>
    %57 = arith.addf %55, %56 : vector<8x32xf32>
    %58 = math.tanh %57 : vector<8x32xf32>
    %59 = arith.mulf %54, %58 : vector<8x32xf32>
    %60 = vector.extract_strided_slice %13 {offsets = [16, 0], sizes = [8, 128], strides = [1, 1]} : vector<64x128xf32> to vector<8x128xf32>
    %cst_20 = arith.constant dense<0.000000e+00> : vector<8x128xf32>
    %61 = tpu.matmul %59, %14, %cst_20 {dimension_numbers = #tpu.dot_dimension_numbers<[1], [0], [0], [1], [0, 0, 1, 1], [], []>} : vector<8x32xf32>, vector<32x128xf32>, vector<8x128xf32> -> vector<8x128xf32>
    %62 = arith.addf %60, %61 : vector<8x128xf32>
    %63 = arith.negf %62 : vector<8x128xf32>
    %64 = math.exp %63 : vector<8x128xf32>
    %cst_21 = arith.constant 1.000000e+00 : f32
    %65 = vector.broadcast %cst_21 : f32 to vector<8x128xf32>
    %66 = arith.addf %65, %64 : vector<8x128xf32>
    %67 = arith.divf %65, %66 : vector<8x128xf32>
    %cst_22 = arith.constant 2.000000e+00 : f32
    %68 = vector.broadcast %cst_22 : f32 to vector<8x128xf32>
    %69 = arith.mulf %68, %67 : vector<8x128xf32>
    %cst_23 = arith.constant 1.000000e+00 : f32
    %70 = vector.broadcast %cst_23 : f32 to vector<8x128xf32>
    %71 = arith.subf %69, %70 : vector<8x128xf32>
    %72 = arith.select %20, %71, %67 : vector<8x128xi1>, vector<8x128xf32>
    %73 = vector.extract_strided_slice %72 {offsets = [0, 0], sizes = [8, 32], strides = [1, 1]} : vector<8x128xf32> to vector<8x32xf32>
    %74 = vector.extract_strided_slice %72 {offsets = [0, 32], sizes = [8, 32], strides = [1, 1]} : vector<8x128xf32> to vector<8x32xf32>
    %75 = vector.extract_strided_slice %72 {offsets = [0, 64], sizes = [8, 32], strides = [1, 1]} : vector<8x128xf32> to vector<8x32xf32>
    %76 = vector.extract_strided_slice %72 {offsets = [0, 96], sizes = [8, 32], strides = [1, 1]} : vector<8x128xf32> to vector<8x32xf32>
    %77 = arith.mulf %74, %57 : vector<8x32xf32>
    %78 = arith.mulf %73, %75 : vector<8x32xf32>
    %79 = arith.addf %77, %78 : vector<8x32xf32>
    %80 = math.tanh %79 : vector<8x32xf32>
    %81 = arith.mulf %76, %80 : vector<8x32xf32>
    %82 = vector.extract_strided_slice %13 {offsets = [24, 0], sizes = [8, 128], strides = [1, 1]} : vector<64x128xf32> to vector<8x128xf32>
    %cst_24 = arith.constant dense<0.000000e+00> : vector<8x128xf32>
    %83 = tpu.matmul %81, %14, %cst_24 {dimension_numbers = #tpu.dot_dimension_numbers<[1], [0], [0], [1], [0, 0, 1, 1], [], []>} : vector<8x32xf32>, vector<32x128xf32>, vector<8x128xf32> -> vector<8x128xf32>
    %84 = arith.addf %82, %83 : vector<8x128xf32>
    %85 = arith.negf %84 : vector<8x128xf32>
    %86 = math.exp %85 : vector<8x128xf32>
    %cst_25 = arith.constant 1.000000e+00 : f32
    %87 = vector.broadcast %cst_25 : f32 to vector<8x128xf32>
    %88 = arith.addf %87, %86 : vector<8x128xf32>
    %89 = arith.divf %87, %88 : vector<8x128xf32>
    %cst_26 = arith.constant 2.000000e+00 : f32
    %90 = vector.broadcast %cst_26 : f32 to vector<8x128xf32>
    %91 = arith.mulf %90, %89 : vector<8x128xf32>
    %cst_27 = arith.constant 1.000000e+00 : f32
    %92 = vector.broadcast %cst_27 : f32 to vector<8x128xf32>
    %93 = arith.subf %91, %92 : vector<8x128xf32>
    %94 = arith.select %20, %93, %89 : vector<8x128xi1>, vector<8x128xf32>
    %95 = vector.extract_strided_slice %94 {offsets = [0, 0], sizes = [8, 32], strides = [1, 1]} : vector<8x128xf32> to vector<8x32xf32>
    %96 = vector.extract_strided_slice %94 {offsets = [0, 32], sizes = [8, 32], strides = [1, 1]} : vector<8x128xf32> to vector<8x32xf32>
    %97 = vector.extract_strided_slice %94 {offsets = [0, 64], sizes = [8, 32], strides = [1, 1]} : vector<8x128xf32> to vector<8x32xf32>
    %98 = vector.extract_strided_slice %94 {offsets = [0, 96], sizes = [8, 32], strides = [1, 1]} : vector<8x128xf32> to vector<8x32xf32>
    %99 = arith.mulf %96, %79 : vector<8x32xf32>
    %100 = arith.mulf %95, %97 : vector<8x32xf32>
    %101 = arith.addf %99, %100 : vector<8x32xf32>
    %102 = math.tanh %101 : vector<8x32xf32>
    %103 = arith.mulf %98, %102 : vector<8x32xf32>
    %104 = vector.extract_strided_slice %13 {offsets = [32, 0], sizes = [8, 128], strides = [1, 1]} : vector<64x128xf32> to vector<8x128xf32>
    %cst_28 = arith.constant dense<0.000000e+00> : vector<8x128xf32>
    %105 = tpu.matmul %103, %14, %cst_28 {dimension_numbers = #tpu.dot_dimension_numbers<[1], [0], [0], [1], [0, 0, 1, 1], [], []>} : vector<8x32xf32>, vector<32x128xf32>, vector<8x128xf32> -> vector<8x128xf32>
    %106 = arith.addf %104, %105 : vector<8x128xf32>
    %107 = arith.negf %106 : vector<8x128xf32>
    %108 = math.exp %107 : vector<8x128xf32>
    %cst_29 = arith.constant 1.000000e+00 : f32
    %109 = vector.broadcast %cst_29 : f32 to vector<8x128xf32>
    %110 = arith.addf %109, %108 : vector<8x128xf32>
    %111 = arith.divf %109, %110 : vector<8x128xf32>
    %cst_30 = arith.constant 2.000000e+00 : f32
    %112 = vector.broadcast %cst_30 : f32 to vector<8x128xf32>
    %113 = arith.mulf %112, %111 : vector<8x128xf32>
    %cst_31 = arith.constant 1.000000e+00 : f32
    %114 = vector.broadcast %cst_31 : f32 to vector<8x128xf32>
    %115 = arith.subf %113, %114 : vector<8x128xf32>
    %116 = arith.select %20, %115, %111 : vector<8x128xi1>, vector<8x128xf32>
    %117 = vector.extract_strided_slice %116 {offsets = [0, 0], sizes = [8, 32], strides = [1, 1]} : vector<8x128xf32> to vector<8x32xf32>
    %118 = vector.extract_strided_slice %116 {offsets = [0, 32], sizes = [8, 32], strides = [1, 1]} : vector<8x128xf32> to vector<8x32xf32>
    %119 = vector.extract_strided_slice %116 {offsets = [0, 64], sizes = [8, 32], strides = [1, 1]} : vector<8x128xf32> to vector<8x32xf32>
    %120 = vector.extract_strided_slice %116 {offsets = [0, 96], sizes = [8, 32], strides = [1, 1]} : vector<8x128xf32> to vector<8x32xf32>
    %121 = arith.mulf %118, %101 : vector<8x32xf32>
    %122 = arith.mulf %117, %119 : vector<8x32xf32>
    %123 = arith.addf %121, %122 : vector<8x32xf32>
    %124 = math.tanh %123 : vector<8x32xf32>
    %125 = arith.mulf %120, %124 : vector<8x32xf32>
    %126 = vector.extract_strided_slice %13 {offsets = [40, 0], sizes = [8, 128], strides = [1, 1]} : vector<64x128xf32> to vector<8x128xf32>
    %cst_32 = arith.constant dense<0.000000e+00> : vector<8x128xf32>
    %127 = tpu.matmul %125, %14, %cst_32 {dimension_numbers = #tpu.dot_dimension_numbers<[1], [0], [0], [1], [0, 0, 1, 1], [], []>} : vector<8x32xf32>, vector<32x128xf32>, vector<8x128xf32> -> vector<8x128xf32>
    %128 = arith.addf %126, %127 : vector<8x128xf32>
    %129 = arith.negf %128 : vector<8x128xf32>
    %130 = math.exp %129 : vector<8x128xf32>
    %cst_33 = arith.constant 1.000000e+00 : f32
    %131 = vector.broadcast %cst_33 : f32 to vector<8x128xf32>
    %132 = arith.addf %131, %130 : vector<8x128xf32>
    %133 = arith.divf %131, %132 : vector<8x128xf32>
    %cst_34 = arith.constant 2.000000e+00 : f32
    %134 = vector.broadcast %cst_34 : f32 to vector<8x128xf32>
    %135 = arith.mulf %134, %133 : vector<8x128xf32>
    %cst_35 = arith.constant 1.000000e+00 : f32
    %136 = vector.broadcast %cst_35 : f32 to vector<8x128xf32>
    %137 = arith.subf %135, %136 : vector<8x128xf32>
    %138 = arith.select %20, %137, %133 : vector<8x128xi1>, vector<8x128xf32>
    %139 = vector.extract_strided_slice %138 {offsets = [0, 0], sizes = [8, 32], strides = [1, 1]} : vector<8x128xf32> to vector<8x32xf32>
    %140 = vector.extract_strided_slice %138 {offsets = [0, 32], sizes = [8, 32], strides = [1, 1]} : vector<8x128xf32> to vector<8x32xf32>
    %141 = vector.extract_strided_slice %138 {offsets = [0, 64], sizes = [8, 32], strides = [1, 1]} : vector<8x128xf32> to vector<8x32xf32>
    %142 = vector.extract_strided_slice %138 {offsets = [0, 96], sizes = [8, 32], strides = [1, 1]} : vector<8x128xf32> to vector<8x32xf32>
    %143 = arith.mulf %140, %123 : vector<8x32xf32>
    %144 = arith.mulf %139, %141 : vector<8x32xf32>
    %145 = arith.addf %143, %144 : vector<8x32xf32>
    %146 = math.tanh %145 : vector<8x32xf32>
    %147 = arith.mulf %142, %146 : vector<8x32xf32>
    %148 = vector.extract_strided_slice %13 {offsets = [48, 0], sizes = [8, 128], strides = [1, 1]} : vector<64x128xf32> to vector<8x128xf32>
    %cst_36 = arith.constant dense<0.000000e+00> : vector<8x128xf32>
    %149 = tpu.matmul %147, %14, %cst_36 {dimension_numbers = #tpu.dot_dimension_numbers<[1], [0], [0], [1], [0, 0, 1, 1], [], []>} : vector<8x32xf32>, vector<32x128xf32>, vector<8x128xf32> -> vector<8x128xf32>
    %150 = arith.addf %148, %149 : vector<8x128xf32>
    %151 = arith.negf %150 : vector<8x128xf32>
    %152 = math.exp %151 : vector<8x128xf32>
    %cst_37 = arith.constant 1.000000e+00 : f32
    %153 = vector.broadcast %cst_37 : f32 to vector<8x128xf32>
    %154 = arith.addf %153, %152 : vector<8x128xf32>
    %155 = arith.divf %153, %154 : vector<8x128xf32>
    %cst_38 = arith.constant 2.000000e+00 : f32
    %156 = vector.broadcast %cst_38 : f32 to vector<8x128xf32>
    %157 = arith.mulf %156, %155 : vector<8x128xf32>
    %cst_39 = arith.constant 1.000000e+00 : f32
    %158 = vector.broadcast %cst_39 : f32 to vector<8x128xf32>
    %159 = arith.subf %157, %158 : vector<8x128xf32>
    %160 = arith.select %20, %159, %155 : vector<8x128xi1>, vector<8x128xf32>
    %161 = vector.extract_strided_slice %160 {offsets = [0, 0], sizes = [8, 32], strides = [1, 1]} : vector<8x128xf32> to vector<8x32xf32>
    %162 = vector.extract_strided_slice %160 {offsets = [0, 32], sizes = [8, 32], strides = [1, 1]} : vector<8x128xf32> to vector<8x32xf32>
    %163 = vector.extract_strided_slice %160 {offsets = [0, 64], sizes = [8, 32], strides = [1, 1]} : vector<8x128xf32> to vector<8x32xf32>
    %164 = vector.extract_strided_slice %160 {offsets = [0, 96], sizes = [8, 32], strides = [1, 1]} : vector<8x128xf32> to vector<8x32xf32>
    %165 = arith.mulf %162, %145 : vector<8x32xf32>
    %166 = arith.mulf %161, %163 : vector<8x32xf32>
    %167 = arith.addf %165, %166 : vector<8x32xf32>
    %168 = math.tanh %167 : vector<8x32xf32>
    %169 = arith.mulf %164, %168 : vector<8x32xf32>
    %170 = vector.extract_strided_slice %13 {offsets = [56, 0], sizes = [8, 128], strides = [1, 1]} : vector<64x128xf32> to vector<8x128xf32>
    %cst_40 = arith.constant dense<0.000000e+00> : vector<8x128xf32>
    %171 = tpu.matmul %169, %14, %cst_40 {dimension_numbers = #tpu.dot_dimension_numbers<[1], [0], [0], [1], [0, 0, 1, 1], [], []>} : vector<8x32xf32>, vector<32x128xf32>, vector<8x128xf32> -> vector<8x128xf32>
    %172 = arith.addf %170, %171 : vector<8x128xf32>
    %173 = arith.negf %172 : vector<8x128xf32>
    %174 = math.exp %173 : vector<8x128xf32>
    %cst_41 = arith.constant 1.000000e+00 : f32
    %175 = vector.broadcast %cst_41 : f32 to vector<8x128xf32>
    %176 = arith.addf %175, %174 : vector<8x128xf32>
    %177 = arith.divf %175, %176 : vector<8x128xf32>
    %cst_42 = arith.constant 2.000000e+00 : f32
    %178 = vector.broadcast %cst_42 : f32 to vector<8x128xf32>
    %179 = arith.mulf %178, %177 : vector<8x128xf32>
    %cst_43 = arith.constant 1.000000e+00 : f32
    %180 = vector.broadcast %cst_43 : f32 to vector<8x128xf32>
    %181 = arith.subf %179, %180 : vector<8x128xf32>
    %182 = arith.select %20, %181, %177 : vector<8x128xi1>, vector<8x128xf32>
    %183 = vector.extract_strided_slice %182 {offsets = [0, 0], sizes = [8, 32], strides = [1, 1]} : vector<8x128xf32> to vector<8x32xf32>
    %184 = vector.extract_strided_slice %182 {offsets = [0, 32], sizes = [8, 32], strides = [1, 1]} : vector<8x128xf32> to vector<8x32xf32>
    %185 = vector.extract_strided_slice %182 {offsets = [0, 64], sizes = [8, 32], strides = [1, 1]} : vector<8x128xf32> to vector<8x32xf32>
    %186 = vector.extract_strided_slice %182 {offsets = [0, 96], sizes = [8, 32], strides = [1, 1]} : vector<8x128xf32> to vector<8x32xf32>
    %187 = arith.mulf %184, %167 : vector<8x32xf32>
    %188 = arith.mulf %183, %185 : vector<8x32xf32>
    %189 = arith.addf %187, %188 : vector<8x32xf32>
    %190 = math.tanh %189 : vector<8x32xf32>
    %191 = arith.mulf %186, %190 : vector<8x32xf32>
    %c0_44 = arith.constant 0 : index
    %c0_45 = arith.constant 0 : index
    %192 = vector.load %arg6[%c0_44, %c0_45] : memref<32x128xf32, #tpu.memory_space<vmem>>, vector<32x128xf32>
    %cst_46 = arith.constant dense<0.000000e+00> : vector<8x128xf32>
    %193 = tpu.matmul %191, %192, %cst_46 {dimension_numbers = #tpu.dot_dimension_numbers<[1], [0], [0], [1], [0, 0, 1, 1], [], []>} : vector<8x32xf32>, vector<32x128xf32>, vector<8x128xf32> -> vector<8x128xf32>
    %c0_47 = arith.constant 0 : index
    %c0_48 = arith.constant 0 : index
    %194 = vector.load %arg7[%c0_47, %c0_48] : memref<1x128xf32, #tpu.memory_space<vmem>>, vector<1x128xf32>
    %195 = vector.broadcast %194 : vector<1x128xf32> to vector<8x128xf32>
    %196 = arith.addf %193, %195 : vector<8x128xf32>
    %c0_49 = arith.constant 0 : index
    %c0_50 = arith.constant 0 : index
    %197 = vector.load %arg8[%c0_49, %c0_50] : memref<8x128xf32, #tpu.memory_space<vmem>>, vector<8x128xf32>
    tpu.vector_store %arg8[%c0_49, %c0_50], %196 {strides = array<i32>} : memref<8x128xf32, #tpu.memory_space<vmem>>, vector<8x128xf32>,
    return
  }
}

</mosaic_0001>

<bundles_post_ra>
// kernel: tpu_custom_call.1
= control target key start
LH: loop header
LB: loop body
LE: loop exit
PB: predicated region body
PF: predicated region fallthrough
CT: control target
= control target key end

     0   :  { %13 = vsyncpa [#allocation3], 0  ;;  %s1988_s0 = inlined_call_operand.hbm [shape: f32[64,128], index: 0, kind: input, shape index: {}]   ;;  %s1989_s1 = inlined_call_operand.hbm [shape: f32[128,128], index: 1, kind: input, shape index: {}]   ;;  %s1990_s2 = inlined_call_operand.vmem [shape: f32[1,128], index: 2, kind: input, shape index: {}]   ;;  %s1991_s3 = inlined_call_operand.hbm [shape: f32[128,128], index: 3, kind: input, shape index: {}]   ;;  %s1992_s4 = inlined_call_operand.hbm [shape: f32[32,128], index: 4, kind: input, shape index: {}]   ;;  %s1993_s5 = inlined_call_operand.vmem [shape: f32[1,128], index: 5, kind: input, shape index: {}]   ;;  %s1994_s6 = inlined_call_operand.hbm [shape: f32[32,128], index: 6, kind: input, shape index: {}]   ;;  %s1995_s7 = inlined_call_operand.vmem [shape: f32[1,128], index: 7, kind: input, shape index: {}]   ;;  %s1996_s8 = inlined_call_operand.hbm [shape: f32[8,128], index: 8, kind: output, shape index: {}]  }
   0x1   :  { %14 = vsyncpa [#allocation6], 0 }
   0x2   :  { %15 = vsyncpa [#allocation9], 0 }
   0x3   :  { %16 = vsyncpa [#allocation4], 0  ;;  %s1710_s27 = smov [#allocation5]   ;;  %s1711_s29 = smov [#allocation8]  }
   0x4   :  { %s34_s28 = sshll.u32 %s1710_s27, 4  ;;  %s60_s30 = sshll.u32 %s1711_s29, 4  ;;  %s35_s28 = int_to_ptr.vmem [resolvable:$true] %s34_s28  ;;  %s61_s30 = int_to_ptr.vmem [resolvable:$true] %s60_s30 }
   0x5   :  { %s1590_s9 = scalar_lea.vmem %s35_s28, 2048  ;;  %p1595_p1 = scmp.lt.s32.totalorder %s35_s28, %s35_s28 }
   0x6   :  { %p1591_p0 = scmp.ne.s32.totalorder %s35_s28, %s1590_s9  ;;  %p1596_p2 = scmp.lt.s32.totalorder %s1590_s9, %s1590_s9 }
   0x8   :  { %p1597_p3 = por %p1596_p2, %p1595_p1 }
   0xa   :  { %p1598_p4 = pnand %p1597_p3, %p1591_p0 }
   0xc   :  { %1601 = shalt.err (!%p1598_p4)
}
   0xd   :  { %s1712_s10 = smov 128   ;;  %s1713_s11 = smov 8  }
   0xe   :  { %40 = dma.hbm_to_vmem [thread:$0]  %s1989_s1, 2048, %s35_s28, [#allocation6], %s1712_s10, %s1712_s10, %s1713_s11  }
   0xf   :  { %s1610_s14 = scalar_lea.vmem %s61_s30, 512  ;;  %p1615_p6 = scmp.lt.s32.totalorder %s61_s30, %s61_s30 }
  0x10   :  { %p1611_p5 = scmp.ne.s32.totalorder %s61_s30, %s1610_s14  ;;  %p1616_p7 = scmp.lt.s32.totalorder %s1610_s14, %s1610_s14 }
  0x12   :  { %p1617_p8 = por %p1616_p7, %p1615_p6 }
  0x14   :  { %p1618_p9 = pnand %p1617_p8, %p1611_p5 }
  0x16   :  { %1621 = shalt.err (!%p1618_p9)
}
  0x17   :  { %66 = dma.hbm_to_vmem [thread:$0]  %s1992_s4, 512, %s61_s30, [#allocation9], %s1712_s10, %s1712_s10, %s1713_s11  }
  0x18   :  { %s1714_s17 = smov [#allocation2]   ;;  %s1715_s19 = smov [#allocation7]  }
  0x19   :  { %s22_s18 = sshll.u32 %s1714_s17, 4  ;;  %s48_s20 = sshll.u32 %s1715_s19, 4  ;;  %s23_s18 = int_to_ptr.vmem [resolvable:$true] %s22_s18  ;;  %s49_s20 = int_to_ptr.vmem [resolvable:$true] %s48_s20 }
  0x1a   :  { %s1630_s1 = scalar_lea.vmem %s23_s18, 1024  ;;  %p1635_p11 = scmp.lt.s32.totalorder %s23_s18, %s23_s18 }
  0x1b   :  { %p1631_p10 = scmp.ne.s32.totalorder %s23_s18, %s1630_s1  ;;  %p1636_p12 = scmp.lt.s32.totalorder %s1630_s1, %s1630_s1 }
  0x1d   :  { %p1637_p13 = por %p1636_p12, %p1635_p11 }
  0x1f   :  { %p1638_p0 = pnand %p1637_p13, %p1631_p10 }
  0x21   :  { %1641 = shalt.err (!%p1638_p0)
}
  0x22   :  { %28 = dma.hbm_to_vmem [thread:$0]  %s1988_s0, 1024, %s23_s18, [#allocation3], %s1712_s10, %s1712_s10, %s1713_s11  }
  0x23   :  { %s1650_s4 = scalar_lea.vmem %s49_s20, 2048  ;;  %p1655_p2 = scmp.lt.s32.totalorder %s49_s20, %s49_s20 }
  0x24   :  { %p1651_p1 = scmp.ne.s32.totalorder %s49_s20, %s1650_s4  ;;  %p1656_p3 = scmp.lt.s32.totalorder %s1650_s4, %s1650_s4 }
  0x26   :  { %p1657_p4 = por %p1656_p3, %p1655_p2 }
  0x28   :  { %p1658_p5 = pnand %p1657_p4, %p1651_p1 }
  0x2a   :  { %1661 = shalt.err (!%p1658_p5)
}
  0x2b   :  { %54 = dma.hbm_to_vmem [thread:$0]  %s1991_s3, 2048, %s49_s20, [#allocation6], %s1712_s10, %s1712_s10, %s1713_s11  }
  0x2c   :  { %s1716_s25 = smov [#allocation10]  }
  0x2d   :  { %s74_s26 = sshll.u32 %s1716_s25, 4  ;;  %s75_s26 = int_to_ptr.vmem [resolvable:$true] %s74_s26 }
  0x2e   :  { %s1670_s27 = scalar_lea.vmem %s75_s26, 512  ;;  %p1675_p7 = scmp.lt.s32.totalorder %s75_s26, %s75_s26 }
  0x2f   :  { %p1671_p6 = scmp.ne.s32.totalorder %s75_s26, %s1670_s27  ;;  %p1676_p8 = scmp.lt.s32.totalorder %s1670_s27, %s1670_s27 }
  0x31   :  { %p1677_p9 = por %p1676_p8, %p1675_p7 }
  0x33   :  { %p1678_p10 = pnand %p1677_p9, %p1671_p6 }
  0x35   :  { %1681 = shalt.err (!%p1678_p10)
}
  0x36   :  { %80 = dma.hbm_to_vmem [thread:$0]  %s1994_s6, 512, %s75_s26, [#allocation9], %s1712_s10, %s1712_s10, %s1713_s11  }
  0x37   :  { %1702 = dma.done.wait [#allocation3], 1024  }
  0x38   :  { %1703 = vsyncadd [#allocation3], 4294966272 }
  0x39   :  { %1704 = dma.done.wait [#allocation6], 4096  }
  0x3a   :  { %1705 = vsyncadd [#allocation6], 4294963200 }
  0x3b   :  { %1706 = dma.done.wait [#allocation9], 1024  }
  0x3c   :  { %1707 = vsyncadd [#allocation9], 4294966272  ;;  %v121_v0 = vld [vmem:[#allocation5 + $0x78] sm:$0xff]  ;;  %v120_v1 = vld [vmem:[#allocation5 + $0x70] sm:$0xff]  ;;  %v382_v50 = vlaneseq  ;;  %v1718_v62 = vmov 0.0   ;;  %vm1720_vm3 = vmmov 0  }
  0x3d   :  { %1345 = vmatprep.subr.mxu0 %v121_v0  ;;  %v119_v2 = vld [vmem:[#allocation5 + $0x68] sm:$0xff]  ;;  %v118_v3 = vld [vmem:[#allocation5 + $0x60] sm:$0xff]  ;;  %v117_v5 = vld [vmem:[#allocation5 + $0x58] sm:$0xff]  ;;  %s1721_s9 = smov 32   ;;  %vm410_vm4 = vcmask 261120   ;;  %s1722_s12 = smov [#allocation11]  }
  0x3e   :  { %1346 = vmatpush3.msra.mxu0 %v121_v0  ;;  %v98_v4 = vld [vmem:[#allocation2] sm:$0xff]  ;;  %v265_v6 = vld [vmem:[#allocation7 + $0x78] sm:$0xff]  ;;  %v264_v7 = vld [vmem:[#allocation7 + $0x70] sm:$0xff]  ;;  %v383_v51 = vand.u32 127, %v382_v50  ;;  %s1219_s13 = sshll.u32 %s1722_s12, 4  ;;  %s1220_s13 = int_to_ptr.vmem [resolvable:$true] %s1219_s13 }
  0x3f   :  { %1347 = vmatprep.subr.mxu0 %v120_v1  ;;  %1377 = vmatprep.mubr.f32.mxu0 %v98_v4  ;;  %v116_v8 = vld [vmem:[#allocation5 + $0x50] sm:$0xff]  ;;  %v263_v9 = vld [vmem:[#allocation7 + $0x68] sm:$0xff]  ;;  %v262_v11 = vld [vmem:[#allocation7 + $0x60] sm:$0xff]  ;;  %s1682_s14 = scalar_lea.vmem %s1220_s13, 128  ;;  %p1687_p12 = scmp.lt.s32.totalorder %s1220_s13, %s1220_s13 }
  0x40   :  { %1348 = vmatpush3.msra.mxu0 %v120_v1  ;;  %1389 = vmatprep.subr.mxu1 %v265_v6  ;;  %v115_v10 = vld [vmem:[#allocation5 + $0x48] sm:$0xff]  ;;  %v114_v12 = vld [vmem:[#allocation5 + $0x40] sm:$0xff]  ;;  %v261_v13 = vld [vmem:[#allocation7 + $0x58] sm:$0xff]  ;;  %vm384_vm0 = vcmp.ge.s32.totalorder %v383_v51, 64  ;;  %vm385_vm1 = vcmp.lt.s32.totalorder %v383_v51, 96  ;;  %p1683_p11 = scmp.ne.s32.totalorder %s1220_s13, %s1682_s14  ;;  %p1688_p13 = scmp.lt.s32.totalorder %s1682_s14, %s1682_s14 }
  0x41   :  { %1349 = vmatprep.subr.mxu0 %v119_v2  ;;  %1390 = vmatpush3.msra.mxu1 %v265_v6  ;;  %v113_v14 = vld [vmem:[#allocation5 + $0x38] sm:$0xff]  ;;  %v260_v15 = vld [vmem:[#allocation7 + $0x50] sm:$0xff]  ;;  %v259_v17 = vld [vmem:[#allocation7 + $0x48] sm:$0xff] }
  0x42   :  { %1350 = vmatpush3.msra.mxu0 %v119_v2  ;;  %1391 = vmatprep.subr.mxu1 %v264_v7  ;;  %v112_v16 = vld [vmem:[#allocation5 + $0x30] sm:$0xff]  ;;  %v111_v18 = vld [vmem:[#allocation5 + $0x28] sm:$0xff]  ;;  %v258_v19 = vld [vmem:[#allocation7 + $0x40] sm:$0xff]  ;;  %p1689_p0 = por %p1688_p13, %p1687_p12 }
  0x43   :  { %1351 = vmatprep.subr.mxu0 %v118_v3  ;;  %1392 = vmatpush3.msra.mxu1 %v264_v7  ;;  %v110_v20 = vld [vmem:[#allocation5 + $0x20] sm:$0xff]  ;;  %v257_v21 = vld [vmem:[#allocation7 + $0x38] sm:$0xff]  ;;  %v256_v23 = vld [vmem:[#allocation7 + $0x30] sm:$0xff] }
  0x44   :  { %1352 = vmatpush3.msra.mxu0 %v118_v3  ;;  %1393 = vmatprep.subr.mxu1 %v263_v9  ;;  %v109_v22 = vld [vmem:[#allocation5 + $0x18] sm:$0xff]  ;;  %v108_v24 = vld [vmem:[#allocation5 + $0x10] sm:$0xff]  ;;  %v255_v25 = vld [vmem:[#allocation7 + $0x28] sm:$0xff]  ;;  %p1690_p1 = pnand %p1689_p0, %p1683_p11 }
  0x45   :  { %1353 = vmatprep.subr.mxu0 %v117_v5  ;;  %1394 = vmatpush3.msra.mxu1 %v263_v9  ;;  %v107_v26 = vld [vmem:[#allocation5 + $0x8] sm:$0xff]  ;;  %v106_v27 = vld [vmem:[#allocation5] sm:$0xff]  ;;  %v253_v30 = vld [vmem:[#allocation7 + $0x18] sm:$0xff] }
  0x46   :  { %1354 = vmatpush3.msra.mxu0 %v117_v5  ;;  %1395 = vmatprep.subr.mxu1 %v262_v11  ;;  %v99_v28 = vld [vmem:[#allocation2 + $0x8] sm:$0xff]  ;;  %v254_v29 = vld [vmem:[#allocation7 + $0x20] sm:$0xff]  ;;  %v252_v31 = vld [vmem:[#allocation7 + $0x10] sm:$0xff] }
  0x47   :  { %1355 = vmatprep.subr.mxu0 %v116_v8  ;;  %1396 = vmatpush3.msra.mxu1 %v262_v11  ;;  %v251_v32 = vld [vmem:[#allocation7 + $0x8] sm:$0xff]  ;;  %v250_v33 = vld [vmem:[#allocation7] sm:$0xff]  ;;  %vm1813_vm2 = vmand %vm384_vm0, %vm385_vm1 }
  0x48   :  { %1356 = vmatpush3.msra.mxu0 %v116_v8  ;;  %1397 = vmatprep.subr.mxu1 %v261_v13  ;;  %v1801_v34 = vld [vmem:[%s1990_s2] ss:$0 sm:$0xff]  ;;  %s1717_s2 = smov 64   ;;  %v100_v59 = vld [vmem:[#allocation2 + $0x10] sm:$0xff]  ;;  %v101_v60 = vld [vmem:[#allocation2 + $0x18] sm:$0xff] }
  0x49   :  { %1357 = vmatprep.subr.mxu0 %v115_v10  ;;  %1398 = vmatpush3.msra.mxu1 %v261_v13  ;;  %v1810_v44 = vld [vmem:[%s1993_s5] ss:$0 sm:$0xff]  ;;  %v1821_v63 = vld [vmem:[#allocation8 + $0x18] sm:$0xff]  ;;  %v1823_v0 = vld [vmem:[#allocation8 + $0x10] sm:$0xff]  ;;  %s1719_s5 = smov 96  }
  0x4a   :  { %1358 = vmatpush3.msra.mxu0 %v115_v10  ;;  %1399 = vmatprep.subr.mxu1 %v260_v15  ;;  %v102_v61 = vld [vmem:[#allocation2 + $0x20] sm:$0xff]  ;;  %v103_v1 = vld [vmem:[#allocation2 + $0x28] sm:$0xff]  ;;  %v104_v2 = vld [vmem:[#allocation2 + $0x30] sm:$0xff] }
  0x4b   :  { %1359 = vmatprep.subr.mxu0 %v114_v12  ;;  %1400 = vmatpush3.msra.mxu1 %v260_v15  ;;  %v1828_v3 = vld [vmem:[#allocation8 + $0x8] sm:$0xff]  ;;  %v1834_v4 = vld [vmem:[#allocation8] sm:$0xff]  ;;  %v105_v5 = vld [vmem:[#allocation2 + $0x38] sm:$0xff] }
  0x4c   :  { %1360 = vmatpush3.msra.mxu0 %v114_v12  ;;  %1401 = vmatprep.subr.mxu1 %v259_v17  ;;  %v1126_v54 = vld [vmem:[#allocation10] sm:$0xff] }
  0x4d   :  { %1361 = vmatprep.subr.mxu0 %v113_v14  ;;  %1402 = vmatpush3.msra.mxu1 %v259_v17 }
  0x4e   :  { %1362 = vmatpush3.msra.mxu0 %v113_v14  ;;  %1403 = vmatprep.subr.mxu1 %v258_v19 }
  0x4f   :  { %1363 = vmatprep.subr.mxu0 %v112_v16  ;;  %1404 = vmatpush3.msra.mxu1 %v258_v19 }
  0x50   :  { %1364 = vmatpush3.msra.mxu0 %v112_v16  ;;  %1405 = vmatprep.subr.mxu1 %v257_v21 }
  0x51   :  { %1365 = vmatprep.subr.mxu0 %v111_v18  ;;  %1406 = vmatpush3.msra.mxu1 %v257_v21 }
  0x52   :  { %1366 = vmatpush3.msra.mxu0 %v111_v18  ;;  %1407 = vmatprep.subr.mxu1 %v256_v23 }
  0x53   :  { %1367 = vmatprep.subr.mxu0 %v110_v20  ;;  %1408 = vmatpush3.msra.mxu1 %v256_v23 }
  0x54   :  { %1368 = vmatpush3.msra.mxu0 %v110_v20  ;;  %1409 = vmatprep.subr.mxu1 %v255_v25 }
  0x55   :  { %1369 = vmatprep.subr.mxu0 %v109_v22  ;;  %1410 = vmatpush3.msra.mxu1 %v255_v25 }
  0x56   :  { %1370 = vmatpush3.msra.mxu0 %v109_v22  ;;  %1411 = vmatprep.subr.mxu1 %v254_v29 }
  0x57   :  { %1371 = vmatprep.subr.mxu0 %v108_v24  ;;  %1412 = vmatpush3.msra.mxu1 %v254_v29 }
  0x58   :  { %1372 = vmatpush3.msra.mxu0 %v108_v24  ;;  %1413 = vmatprep.subr.mxu1 %v253_v30 }
  0x59   :  { %1373 = vmatprep.subr.mxu0 %v107_v26  ;;  %1414 = vmatpush3.msra.mxu1 %v253_v30 }
  0x5a   :  { %1374 = vmatpush3.msra.mxu0 %v107_v26  ;;  %1415 = vmatprep.subr.mxu1 %v252_v31 }
  0x5b   :  { %1375 = vmatprep.subr.mxu0 %v106_v27  ;;  %1416 = vmatpush3.msra.mxu1 %v252_v31 }
  0x5c   :  { %1376 = vmatpush3.msra.mxu0 %v106_v27  ;;  %1417 = vmatprep.subr.mxu1 %v251_v32 }
  0x5d   :  { %1378 = vmatmul.mubr.f32.vlgmr.msra.gmra.mxu0 %v99_v28  ;;  %1418 = vmatpush3.msra.mxu1 %v251_v32 }
  0x5e   :  { %1419 = vmatprep.subr.mxu1 %v250_v33  ;;  %1380 = vmatprep.mubr.f32.mxu0 %v100_v59 }
  0x5f   :  { %1420 = vmatpush3.msra.mxu1 %v250_v33  ;;  %1433 = vmatprep.subr.mxu0 %v1718_v62 }
  0x60   :  { %1444 = vmatprep.subr.mxu1 %v1718_v62  ;;  %1434 = vmatpush3.msra.mxu0 %v1821_v63 }
  0x61   :  { %1381 = vmatmul.mubr.f32.gmra.mxu0 %v101_v60  ;;  %1435 = vmatprep.subr.mxu0 %v1718_v62 }
  0x62   :  { %1383 = vmatprep.mubr.f32.mxu0 %v102_v61  ;;  %1436 = vmatpush3.msra.mxu0 %v1823_v0 }
  0x63   :  { %1437 = vmatprep.subr.mxu0 %v1718_v62 }
  0x64   :  { %1438 = vmatpush3.msra.mxu0 %v1828_v3 }
  0x65   :  { %1384 = vmatmul.mubr.f32.gmra.mxu0 %v103_v1  ;;  %1439 = vmatprep.subr.mxu0 %v1718_v62 }
  0x66   :  { %1386 = vmatprep.mubr.f32.mxu0 %v104_v2  ;;  %1440 = vmatpush3.msra.mxu0 %v1834_v4 }
  0x67   :  { %1455 = vmatprep.subr.mxu0 %v1718_v62 }
  0x69   :  { %1387 = vmatmul.mubr.f32.gmra.mxu0 %v105_v5 }
  0x6a   :  { %1441 = vmatprep.mubr.msk.f32.mxu0 %vm1720_vm3, %v1718_v62 }
 0x11d   :  { %v1379_v35 = vpop.f32.mrf.mxu0 }
 0x11e   :  { %v201_v36 = vadd.f32 %v1379_v35, %v1801_v34 }
 0x11f   :  { %v195_v37 = vpop.f32.mrf.mxu0 }
 0x120   :  { %v196_v38 = vadd.f32 %v1801_v34, %v195_v37  ;;  %v235_v39 = vmul.f32 0.01, %v201_v36 }
 0x121   :  { %v1382_v9 = vpop.f32.mrf.mxu0 }
 0x122   :  { %v234_v40 = vmul.f32 0.01, %v196_v38  ;;  %v243_v42 = vmax.f32 %v201_v36, %v235_v39  ;;  %v211_v10 = vadd.f32 %v1382_v9, %v1801_v34 }
 0x123   :  { %v205_v11 = vpop.f32.mrf.mxu0 }
 0x124   :  { %v242_v41 = vmax.f32 %v196_v38, %v234_v40  ;;  %v237_v12 = vmul.f32 0.01, %v211_v10  ;;  %v206_v13 = vadd.f32 %v1801_v34, %v205_v11 }
 0x125   :  { %v1385_v14 = vpop.f32.mrf.mxu0 }
 0x126   :  { %1421 = vmatprep.mubr.f32.mxu1 %v242_v41  ;;  %v236_v15 = vmul.f32 0.01, %v206_v13  ;;  %v221_v16 = vadd.f32 %v1385_v14, %v1801_v34  ;;  %v245_v17 = vmax.f32 %v211_v10, %v237_v12 }
 0x127   :  { %1422 = vmatmul.mubr.f32.vlgmr.msra.gmra.mxu1 %v243_v42  ;;  %v215_v18 = vpop.f32.mrf.mxu0 }
 0x128   :  { %1445 = vmatpush3.msra.mxu1 %v1821_v63  ;;  %v244_v19 = vmax.f32 %v206_v13, %v236_v15  ;;  %v239_v20 = vmul.f32 0.01, %v221_v16  ;;  %v216_v21 = vadd.f32 %v1801_v34, %v215_v18 }
 0x129   :  { %1446 = vmatprep.subr.mxu1 %v1718_v62  ;;  %v1388_v22 = vpop.f32.mrf.mxu0 }
 0x12a   :  { %1447 = vmatpush3.msra.mxu1 %v1823_v0  ;;  %v238_v23 = vmul.f32 0.01, %v216_v21  ;;  %v231_v24 = vadd.f32 %v1388_v22, %v1801_v34  ;;  %1424 = vmatprep.mubr.f32.mxu1 %v244_v19  ;;  %v247_v25 = vmax.f32 %v221_v16, %v239_v20 }
 0x12b   :  { %1448 = vmatprep.subr.mxu1 %v1718_v62  ;;  %v225_v26 = vpop.f32.mrf.mxu0  ;;  %1425 = vmatmul.mubr.f32.gmra.mxu1 %v245_v17 }
 0x12c   :  { %1449 = vmatpush3.msra.mxu1 %v1828_v3  ;;  %v246_v27 = vmax.f32 %v216_v21, %v238_v23  ;;  %v241_v28 = vmul.f32 0.01, %v231_v24  ;;  %v226_v29 = vadd.f32 %v1801_v34, %v225_v26 }
 0x12d   :  { %1450 = vmatprep.subr.mxu1 %v1718_v62 }
 0x12e   :  { %1451 = vmatpush3.msra.mxu1 %v1834_v4  ;;  %v240_v30 = vmul.f32 0.01, %v226_v29  ;;  %1427 = vmatprep.mubr.f32.mxu1 %v246_v27  ;;  %v249_v31 = vmax.f32 %v231_v24, %v241_v28 }
 0x12f   :  { %1466 = vmatprep.subr.mxu1 %v1718_v62  ;;  %1428 = vmatmul.mubr.f32.gmra.mxu1 %v247_v25 }
 0x130   :  { %v248_v32 = vmax.f32 %v226_v29, %v240_v30 }
 0x132   :  { %1430 = vmatprep.mubr.f32.mxu1 %v248_v32 }
 0x133   :  { %1431 = vmatmul.mubr.f32.gmra.mxu1 %v249_v31 }
 0x134   :  { %1452 = vmatprep.mubr.msk.f32.mxu1 %vm1720_vm3, %v1718_v62 }
 0x1e7   :  { %v1805_v43 = vpop.f32.mrf.mxu1 }
 0x1e8   :  { %v345_v34 = vadd.f32 %v1805_v43, %v1810_v44 }
 0x1e9   :  { %v339_v45 = vpop.f32.mrf.mxu1 }
 0x1ea   :  { %v340_v46 = vadd.f32 %v1810_v44, %v339_v45 }
 0x1ec   :  { %v1232_v47 = vmul.f32 -1.442695, %v340_v46 }
 0x1ee   :  { %1534 = vpow2.f32 %v1232_v47 }
 0x1fb   :  { %v1535_v48 = vpop.eup %1534 }
 0x1fc   :  { %v390_v49 = vadd.f32 1.0, %v1535_v48 }
 0x1fe   :  { %1536 = vrcp.f32 %v390_v49 }
 0x20b   :  { %v1537_v52 = vpop.eup %1536 }
 0x20c   :  { %v393_v53 = vmul.f32 2.0, %v1537_v52 }
 0x20e   :  { %v1233_v55 = vadd.f32 -1.0, %v393_v53 }
 0x210   :  { %v395_v56 = vsel %vm1813_vm2, %v1233_v55, %v1537_v52 }
 0x211   :  { %397 = vrot.lane.b32.xlu0 %v395_v56, %s1717_s2 }
 0x283   :  { %v398_v57 = vpop.permute.xlu0 %397 }
 0x284   :  { %v400_v58 = vmul.f32 %v398_v57, %v395_v56  ;;  %v1426_v57 = vpop.f32.mrf.mxu1 }
 0x285   :  { %v355_v24 = vadd.f32 %v1426_v57, %v1810_v44 }
 0x286   :  { %1538 = vtanh.f32 %v400_v58 }
 0x293   :  { %v1539_v6 = vpop.eup %1538 }
 0x294   :  { %403 = vrot.lane.b32.xlu0 %v1539_v6, %s1719_s5 }
 0x298   :  { %494 = vrot.lane.b32.xlu0 %v400_v58, %s1721_s9  ;;  %v349_v58 = vpop.f32.mrf.mxu1 }
 0x299   :  { %v350_v2 = vadd.f32 %v1810_v44, %v349_v58 }
 0x29a   :  { %v1888_v59 = vpop.f32.mrf.mxu1 }
 0x29c   :  { %v1890_v60 = vpop.f32.mrf.mxu1 }
 0x29e   :  { %v1892_v61 = vpop.f32.mrf.mxu1 }
 0x2a0   :  { %v1894_v1 = vpop.f32.mrf.mxu1 }
 0x306   :  { %v404_v7 = vpop.permute.xlu0 %403 }
 0x307   :  { %v406_v8 = vmul.f32 %v404_v7, %v395_v56 }
 0x309   :  { %408 = vrot.lane.b32.xlu1 %v406_v8, %s1721_s9 }
 0x30a   :  { %v495_v43 = vpop.permute.xlu0 %494 }
 0x37b   :  { %v409_v33 = vpop.permute.xlu1 %408 }
 0x37c   :  { %1442 = vmatmul.mubr.msk.f32.vlgmr.msra.gmra.mxu0 %vm410_vm4, %v409_v33 }
 0x37d   :  { %1456 = vmatpush3.msra.mxu0 %v1821_v63  ;;  %1463 = vmatprep.mubr.msk.f32.mxu0 %vm1720_vm3, %v1718_v62 }
 0x37e   :  { %1457 = vmatprep.subr.mxu0 %v1718_v62 }
 0x37f   :  { %1458 = vmatpush3.msra.mxu0 %v1823_v0 }
 0x380   :  { %1459 = vmatprep.subr.mxu0 %v1718_v62 }
 0x381   :  { %1460 = vmatpush3.msra.mxu0 %v1828_v3 }
 0x382   :  { %1461 = vmatprep.subr.mxu0 %v1718_v62 }
 0x383   :  { %1462 = vmatpush3.msra.mxu0 %v1834_v4 }
 0x384   :  { %1477 = vmatprep.subr.mxu0 %v1718_v62 }
 0x43c   :  { %v479_v35 = vpop.f32.mrf.mxu0 }
 0x43d   :  { %v483_v36 = vadd.f32 %v479_v35, %v345_v34 }
 0x43e   :  { %v1443_v37 = vpop.f32.mrf.mxu0 }
 0x43f   :  { %v1235_v38 = vmul.f32 -1.442695, %v483_v36 }
 0x441   :  { %1540 = vpow2.f32 %v1235_v38 }
 0x44e   :  { %v1541_v39 = vpop.eup %1540 }
 0x44f   :  { %v487_v40 = vadd.f32 1.0, %v1541_v39 }
 0x451   :  { %1542 = vrcp.f32 %v487_v40 }
 0x45e   :  { %v1543_v41 = vpop.eup %1542 }
 0x45f   :  { %v490_v42 = vmul.f32 2.0, %v1543_v41 }
 0x461   :  { %v1236_v45 = vadd.f32 -1.0, %v490_v42 }
 0x463   :  { %v492_v46 = vsel %vm1813_vm2, %v1236_v45, %v1543_v41 }
 0x464   :  { %499 = vrot.lane.b32.xlu1 %v492_v46, %s1717_s2  ;;  %v497_v49 = vmul.f32 %v495_v43, %v492_v46 }
 0x4d6   :  { %v500_v47 = vpop.permute.xlu1 %499 }
 0x4d7   :  { %v502_v48 = vmul.f32 %v500_v47, %v492_v46 }
 0x4d9   :  { %504 = vrot.lane.b32.xlu1 %v502_v48, %s1721_s9 }
 0x54b   :  { %v505_v50 = vpop.permute.xlu1 %504 }
 0x54c   :  { %v507_v51 = vadd.f32 %v505_v50, %v497_v49 }
 0x54e   :  { %1544 = vtanh.f32 %v507_v51 }
 0x55b   :  { %v1545_v52 = vpop.eup %1544 }
 0x55c   :  { %510 = vrot.lane.b32.xlu0 %v1545_v52, %s1717_s2 }
 0x5ce   :  { %v511_v53 = vpop.permute.xlu0 %510 }
 0x5cf   :  { %v513_v55 = vmul.f32 %v511_v53, %v492_v46  ;;  %v360_v46 = vadd.f32 %v1810_v44, %v1890_v60 }
 0x5d1   :  { %515 = vrot.lane.b32.xlu1 %v513_v55, %s1721_s9 }
 0x643   :  { %v516_v56 = vpop.permute.xlu1 %515 }
 0x644   :  { %1453 = vmatmul.mubr.msk.f32.vlgmr.msra.gmra.mxu1 %vm410_vm4, %v516_v56 }
 0x645   :  { %1467 = vmatpush3.msra.mxu1 %v1821_v63  ;;  %1474 = vmatprep.mubr.msk.f32.mxu1 %vm1720_vm3, %v1718_v62 }
 0x646   :  { %1468 = vmatprep.subr.mxu1 %v1718_v62 }
 0x647   :  { %1469 = vmatpush3.msra.mxu1 %v1823_v0 }
 0x648   :  { %1470 = vmatprep.subr.mxu1 %v1718_v62 }
 0x649   :  { %1471 = vmatpush3.msra.mxu1 %v1828_v3 }
 0x64a   :  { %1472 = vmatprep.subr.mxu1 %v1718_v62 }
 0x64b   :  { %1473 = vmatpush3.msra.mxu1 %v1834_v4 }
 0x64c   :  { %1488 = vmatprep.subr.mxu1 %v1718_v62 }
 0x704   :  { %v585_v5 = vpop.f32.mrf.mxu1 }
 0x705   :  { %v589_v6 = vadd.f32 %v585_v5, %v350_v2 }
 0x706   :  { %v1454_v7 = vpop.f32.mrf.mxu1 }
 0x707   :  { %v1238_v8 = vmul.f32 -1.442695, %v589_v6 }
 0x709   :  { %1546 = vpow2.f32 %v1238_v8 }
 0x716   :  { %v1547_v9 = vpop.eup %1546 }
 0x717   :  { %v593_v10 = vadd.f32 1.0, %v1547_v9 }
 0x719   :  { %1548 = vrcp.f32 %v593_v10  ;;  %v365_v10 = vadd.f32 %v1888_v59, %v1810_v44 }
 0x726   :  { %v1549_v11 = vpop.eup %1548 }
 0x727   :  { %v596_v12 = vmul.f32 2.0, %v1549_v11 }
 0x729   :  { %v1239_v13 = vadd.f32 -1.0, %v596_v12 }
 0x72b   :  { %v598_v14 = vsel %vm1813_vm2, %v1239_v13, %v1549_v11 }
 0x72c   :  { %601 = vrot.lane.b32.xlu0 %v598_v14, %s1717_s2  ;;  %v599_v17 = vmul.f32 %v598_v14, %v507_v51 }
 0x79e   :  { %v602_v15 = vpop.permute.xlu0 %601 }
 0x79f   :  { %v604_v16 = vmul.f32 %v602_v15, %v598_v14 }
 0x7a1   :  { %606 = vrot.lane.b32.xlu1 %v604_v16, %s1721_s9 }
 0x813   :  { %v607_v18 = vpop.permute.xlu1 %606 }
 0x814   :  { %v609_v19 = vadd.f32 %v607_v18, %v599_v17 }
 0x816   :  { %1550 = vtanh.f32 %v609_v19 }
 0x823   :  { %v1551_v20 = vpop.eup %1550 }
 0x824   :  { %612 = vrot.lane.b32.xlu0 %v1551_v20, %s1717_s2 }
 0x896   :  { %v613_v21 = vpop.permute.xlu0 %612 }
 0x897   :  { %v615_v22 = vmul.f32 %v613_v21, %v598_v14 }
 0x899   :  { %617 = vrot.lane.b32.xlu1 %v615_v22, %s1721_s9 }
 0x90b   :  { %v618_v23 = vpop.permute.xlu1 %617 }
 0x90c   :  { %1464 = vmatmul.mubr.msk.f32.vlgmr.msra.gmra.mxu0 %vm410_vm4, %v618_v23 }
 0x90d   :  { %1478 = vmatpush3.msra.mxu0 %v1821_v63  ;;  %1485 = vmatprep.mubr.msk.f32.mxu0 %vm1720_vm3, %v1718_v62 }
 0x90e   :  { %1479 = vmatprep.subr.mxu0 %v1718_v62 }
 0x90f   :  { %1480 = vmatpush3.msra.mxu0 %v1823_v0 }
 0x910   :  { %1481 = vmatprep.subr.mxu0 %v1718_v62 }
 0x911   :  { %1482 = vmatpush3.msra.mxu0 %v1828_v3 }
 0x912   :  { %1483 = vmatprep.subr.mxu0 %v1718_v62 }
 0x913   :  { %1484 = vmatpush3.msra.mxu0 %v1834_v4 }
 0x914   :  { %1499 = vmatprep.subr.mxu0 %v1718_v62 }
 0x9cc   :  { %v687_v25 = vpop.f32.mrf.mxu0 }
 0x9cd   :  { %v691_v26 = vadd.f32 %v687_v25, %v355_v24  ;;  %v370_v25 = vadd.f32 %v1810_v44, %v1894_v1 }
 0x9ce   :  { %v1465_v27 = vpop.f32.mrf.mxu0 }
 0x9cf   :  { %v1241_v28 = vmul.f32 -1.442695, %v691_v26 }
 0x9d1   :  { %1552 = vpow2.f32 %v1241_v28 }
 0x9de   :  { %v1553_v29 = vpop.eup %1552 }
 0x9df   :  { %v695_v30 = vadd.f32 1.0, %v1553_v29 }
 0x9e1   :  { %1554 = vrcp.f32 %v695_v30 }
 0x9ee   :  { %v1555_v31 = vpop.eup %1554 }
 0x9ef   :  { %v698_v32 = vmul.f32 2.0, %v1555_v31 }
 0x9f1   :  { %v1242_v33 = vadd.f32 -1.0, %v698_v32 }
 0x9f3   :  { %v700_v34 = vsel %vm1813_vm2, %v1242_v33, %v1555_v31 }
 0x9f4   :  { %703 = vrot.lane.b32.xlu0 %v700_v34, %s1717_s2  ;;  %v701_v37 = vmul.f32 %v700_v34, %v609_v19 }
 0xa66   :  { %v704_v35 = vpop.permute.xlu0 %703 }
 0xa67   :  { %v706_v36 = vmul.f32 %v704_v35, %v700_v34 }
 0xa69   :  { %708 = vrot.lane.b32.xlu1 %v706_v36, %s1721_s9 }
 0xadb   :  { %v709_v38 = vpop.permute.xlu1 %708 }
 0xadc   :  { %v711_v39 = vadd.f32 %v709_v38, %v701_v37 }
 0xade   :  { %1556 = vtanh.f32 %v711_v39 }
 0xaeb   :  { %v1557_v40 = vpop.eup %1556 }
 0xaec   :  { %714 = vrot.lane.b32.xlu0 %v1557_v40, %s1717_s2 }
 0xb5e   :  { %v715_v41 = vpop.permute.xlu0 %714 }
 0xb5f   :  { %v717_v42 = vmul.f32 %v715_v41, %v700_v34 }
 0xb61   :  { %719 = vrot.lane.b32.xlu1 %v717_v42, %s1721_s9 }
 0xbd3   :  { %v720_v45 = vpop.permute.xlu1 %719 }
 0xbd4   :  { %1475 = vmatmul.mubr.msk.f32.vlgmr.msra.gmra.mxu1 %vm410_vm4, %v720_v45 }
 0xbd5   :  { %1489 = vmatpush3.msra.mxu1 %v1821_v63  ;;  %1496 = vmatprep.mubr.msk.f32.mxu1 %vm1720_vm3, %v1718_v62 }
 0xbd6   :  { %1490 = vmatprep.subr.mxu1 %v1718_v62 }
 0xbd7   :  { %1491 = vmatpush3.msra.mxu1 %v1823_v0 }
 0xbd8   :  { %1492 = vmatprep.subr.mxu1 %v1718_v62 }
 0xbd9   :  { %1493 = vmatpush3.msra.mxu1 %v1828_v3 }
 0xbda   :  { %1494 = vmatprep.subr.mxu1 %v1718_v62 }
 0xbdb   :  { %1495 = vmatpush3.msra.mxu1 %v1834_v4 }
 0xbdc   :  { %1510 = vmatprep.subr.mxu1 %v1718_v62 }
 0xc94   :  { %v789_v47 = vpop.f32.mrf.mxu1 }
 0xc95   :  { %v793_v48 = vadd.f32 %v789_v47, %v360_v46  ;;  %v375_v46 = vadd.f32 %v1892_v61, %v1810_v44 }
 0xc96   :  { %v1476_v43 = vpop.f32.mrf.mxu1 }
 0xc97   :  { %v1244_v49 = vmul.f32 -1.442695, %v793_v48 }
 0xc99   :  { %1558 = vpow2.f32 %v1244_v49 }
 0xca6   :  { %v1559_v50 = vpop.eup %1558 }
 0xca7   :  { %v797_v51 = vadd.f32 1.0, %v1559_v50 }
 0xca9   :  { %1560 = vrcp.f32 %v797_v51 }
 0xcb6   :  { %v1561_v52 = vpop.eup %1560 }
 0xcb7   :  { %v800_v53 = vmul.f32 2.0, %v1561_v52 }
 0xcb9   :  { %v1245_v55 = vadd.f32 -1.0, %v800_v53 }
 0xcbb   :  { %v802_v56 = vsel %vm1813_vm2, %v1245_v55, %v1561_v52 }
 0xcbc   :  { %805 = vrot.lane.b32.xlu0 %v802_v56, %s1717_s2  ;;  %v803_v60 = vmul.f32 %v802_v56, %v711_v39 }
 0xd2e   :  { %v806_v57 = vpop.permute.xlu0 %805 }
 0xd2f   :  { %v808_v58 = vmul.f32 %v806_v57, %v802_v56 }
 0xd31   :  { %810 = vrot.lane.b32.xlu1 %v808_v58, %s1721_s9 }
 0xda3   :  { %v811_v2 = vpop.permute.xlu1 %810 }
 0xda4   :  { %v813_v5 = vadd.f32 %v811_v2, %v803_v60  ;;  %v1129_v2 = vld [vmem:[#allocation10 + $0x18] sm:$0xff] }
 0xda6   :  { %1562 = vtanh.f32 %v813_v5 }
 0xdb3   :  { %v1563_v6 = vpop.eup %1562 }
 0xdb4   :  { %816 = vrot.lane.b32.xlu0 %v1563_v6, %s1717_s2  ;;  %v1127_v6 = vld [vmem:[#allocation10 + $0x8] sm:$0xff] }
 0xe26   :  { %v817_v7 = vpop.permute.xlu0 %816 }
 0xe27   :  { %v819_v8 = vmul.f32 %v817_v7, %v802_v56 }
 0xe29   :  { %821 = vrot.lane.b32.xlu1 %v819_v8, %s1721_s9 }
 0xe9b   :  { %v822_v9 = vpop.permute.xlu1 %821 }
 0xe9c   :  { %1486 = vmatmul.mubr.msk.f32.vlgmr.msra.gmra.mxu0 %vm410_vm4, %v822_v9 }
 0xe9d   :  { %1500 = vmatpush3.msra.mxu0 %v1821_v63  ;;  %1507 = vmatprep.mubr.msk.f32.mxu0 %vm1720_vm3, %v1718_v62 }
 0xe9e   :  { %1501 = vmatprep.subr.mxu0 %v1718_v62 }
 0xe9f   :  { %1502 = vmatpush3.msra.mxu0 %v1823_v0 }
 0xea0   :  { %1503 = vmatprep.subr.mxu0 %v1718_v62 }
 0xea1   :  { %1504 = vmatpush3.msra.mxu0 %v1828_v3 }
 0xea2   :  { %1505 = vmatprep.subr.mxu0 %v1718_v62 }
 0xea3   :  { %1506 = vmatpush3.msra.mxu0 %v1834_v4 }
 0xf5c   :  { %v891_v11 = vpop.f32.mrf.mxu0 }
 0xf5d   :  { %v895_v63 = vadd.f32 %v891_v11, %v365_v10  ;;  %v1255_v11 = vld [vmem:[%s1995_s7] ss:$0 sm:$0xff] }
 0xf5e   :  { %v1487_v12 = vpop.f32.mrf.mxu0 }
 0xf5f   :  { %v1247_v13 = vmul.f32 -1.442695, %v895_v63 }
 0xf61   :  { %1564 = vpow2.f32 %v1247_v13 }
 0xf6e   :  { %v1565_v14 = vpop.eup %1564 }
 0xf6f   :  { %v899_v15 = vadd.f32 1.0, %v1565_v14 }
 0xf71   :  { %1566 = vrcp.f32 %v899_v15 }
 0xf7e   :  { %v1567_v0 = vpop.eup %1566 }
 0xf7f   :  { %v902_v16 = vmul.f32 2.0, %v1567_v0 }
 0xf81   :  { %v1248_v17 = vadd.f32 -1.0, %v902_v16 }
 0xf83   :  { %v904_v3 = vsel %vm1813_vm2, %v1248_v17, %v1567_v0 }
 0xf84   :  { %907 = vrot.lane.b32.xlu0 %v904_v3, %s1717_s2  ;;  %v905_v59 = vmul.f32 %v904_v3, %v813_v5  ;;  %v1128_v5 = vld [vmem:[#allocation10 + $0x10] sm:$0xff] }
 0xff6   :  { %v908_v4 = vpop.permute.xlu0 %907 }
 0xff7   :  { %v910_v18 = vmul.f32 %v908_v4, %v904_v3 }
 0xff9   :  { %912 = vrot.lane.b32.xlu1 %v910_v18, %s1721_s9 }
0x106b   :  { %v913_v19 = vpop.permute.xlu1 %912 }
0x106c   :  { %v915_v20 = vadd.f32 %v913_v19, %v905_v59 }
0x106e   :  { %1568 = vtanh.f32 %v915_v20 }
0x107b   :  { %v1569_v21 = vpop.eup %1568 }
0x107c   :  { %918 = vrot.lane.b32.xlu0 %v1569_v21, %s1717_s2 }
0x10ee   :  { %v919_v22 = vpop.permute.xlu0 %918 }
0x10ef   :  { %v921_v23 = vmul.f32 %v919_v22, %v904_v3 }
0x10f1   :  { %923 = vrot.lane.b32.xlu1 %v921_v23, %s1721_s9 }
0x1163   :  { %v924_v24 = vpop.permute.xlu1 %923 }
0x1164   :  { %1497 = vmatmul.mubr.msk.f32.vlgmr.msra.gmra.mxu1 %vm410_vm4, %v924_v24 }
0x1165   :  { %1518 = vmatprep.mubr.msk.f32.mxu1 %vm1720_vm3, %v1718_v62  ;;  %1511 = vmatpush3.msra.mxu1 %v1129_v2 }
0x1166   :  { %1512 = vmatprep.subr.mxu1 %v1718_v62 }
0x1167   :  { %1513 = vmatpush3.msra.mxu1 %v1128_v5 }
0x1168   :  { %1514 = vmatprep.subr.mxu1 %v1718_v62 }
0x1169   :  { %1515 = vmatpush3.msra.mxu1 %v1127_v6 }
0x116a   :  { %1516 = vmatprep.subr.mxu1 %v1718_v62 }
0x116b   :  { %1517 = vmatpush3.msra.mxu1 %v1126_v54 }
0x1224   :  { %v993_v26 = vpop.f32.mrf.mxu1 }
0x1225   :  { %v997_v27 = vadd.f32 %v993_v26, %v370_v25 }
0x1226   :  { %v1498_v28 = vpop.f32.mrf.mxu1 }
0x1227   :  { %v1250_v29 = vmul.f32 -1.442695, %v997_v27 }
0x1229   :  { %1570 = vpow2.f32 %v1250_v29 }
0x1236   :  { %v1571_v30 = vpop.eup %1570 }
0x1237   :  { %v1001_v31 = vadd.f32 1.0, %v1571_v30 }
0x1239   :  { %1572 = vrcp.f32 %v1001_v31 }
0x1246   :  { %v1573_v32 = vpop.eup %1572 }
0x1247   :  { %v1004_v33 = vmul.f32 2.0, %v1573_v32 }
0x1249   :  { %v1251_v34 = vadd.f32 -1.0, %v1004_v33 }
0x124b   :  { %v1006_v35 = vsel %vm1813_vm2, %v1251_v34, %v1573_v32 }
0x124c   :  { %1009 = vrot.lane.b32.xlu0 %v1006_v35, %s1717_s2  ;;  %v1007_v1 = vmul.f32 %v1006_v35, %v915_v20 }
0x12be   :  { %v1010_v36 = vpop.permute.xlu0 %1009 }
0x12bf   :  { %v1012_v37 = vmul.f32 %v1010_v36, %v1006_v35 }
0x12c1   :  { %1014 = vrot.lane.b32.xlu1 %v1012_v37, %s1721_s9 }
0x1333   :  { %v1015_v38 = vpop.permute.xlu1 %1014 }
0x1334   :  { %v1017_v39 = vadd.f32 %v1015_v38, %v1007_v1 }
0x1336   :  { %1574 = vtanh.f32 %v1017_v39 }
0x1343   :  { %v1575_v40 = vpop.eup %1574 }
0x1344   :  { %1020 = vrot.lane.b32.xlu0 %v1575_v40, %s1717_s2 }
0x13b6   :  { %v1021_v41 = vpop.permute.xlu0 %1020 }
0x13b7   :  { %v1023_v42 = vmul.f32 %v1021_v41, %v1006_v35 }
0x13b9   :  { %1025 = vrot.lane.b32.xlu1 %v1023_v42, %s1721_s9 }
0x142b   :  { %v1026_v45 = vpop.permute.xlu1 %1025 }
0x142c   :  { %1508 = vmatmul.mubr.msk.f32.vlgmr.msra.gmra.mxu0 %vm410_vm4, %v1026_v45 }
0x14ec   :  { %v1095_v47 = vpop.f32.mrf.mxu0 }
0x14ed   :  { %v1099_v48 = vadd.f32 %v1095_v47, %v375_v46 }
0x14ee   :  { %v1509_v43 = vpop.f32.mrf.mxu0 }
0x14ef   :  { %v1253_v49 = vmul.f32 -1.442695, %v1099_v48 }
0x14f1   :  { %1576 = vpow2.f32 %v1253_v49 }
0x14fe   :  { %v1577_v50 = vpop.eup %1576 }
0x14ff   :  { %v1103_v51 = vadd.f32 1.0, %v1577_v50 }
0x1501   :  { %1578 = vrcp.f32 %v1103_v51 }
0x150e   :  { %v1579_v52 = vpop.eup %1578 }
0x150f   :  { %v1106_v53 = vmul.f32 2.0, %v1579_v52 }
0x1511   :  { %v1254_v55 = vadd.f32 -1.0, %v1106_v53 }
0x1513   :  { %v1108_v56 = vsel %vm1813_vm2, %v1254_v55, %v1579_v52 }
0x1514   :  { %1111 = vrot.lane.b32.xlu0 %v1108_v56, %s1717_s2  ;;  %v1109_v44 = vmul.f32 %v1108_v56, %v1017_v39 }
0x1586   :  { %v1112_v57 = vpop.permute.xlu0 %1111 }
0x1587   :  { %v1114_v58 = vmul.f32 %v1112_v57, %v1108_v56 }
0x1589   :  { %1116 = vrot.lane.b32.xlu1 %v1114_v58, %s1721_s9 }
0x15fb   :  { %v1117_v61 = vpop.permute.xlu1 %1116 }
0x15fc   :  { %v1119_v60 = vadd.f32 %v1117_v61, %v1109_v44 }
0x15fe   :  { %1580 = vtanh.f32 %v1119_v60 }
0x160b   :  { %v1581_v7 = vpop.eup %1580 }
0x160c   :  { %1122 = vrot.lane.b32.xlu0 %v1581_v7, %s1717_s2 }
0x167e   :  { %v1123_v8 = vpop.permute.xlu0 %1122 }
0x167f   :  { %v1125_v9 = vmul.f32 %v1123_v8, %v1108_v56 }
0x1681   :  { %1138 = vrot.lane.b32.xlu1 %v1125_v9, %s1721_s9 }
0x16f3   :  { %v1139_v10 = vpop.permute.xlu1 %1138 }
0x16f4   :  { %1519 = vmatmul.mubr.msk.f32.vlgmr.msra.gmra.mxu1 %vm410_vm4, %v1139_v10 }
0x17b4   :  { %v1208_v63 = vpop.f32.mrf.mxu1 }
0x17b5   :  { %v1209_v12 = vadd.f32 %v1255_v11, %v1208_v63 }
0x17b6   :  { %v1520_v62 = vpop.f32.mrf.mxu1 }
0x17b7   :  { %1212 = vst [vmem:[#allocation11] sm:$0xff] %v1209_v12 }
0x17b8   :  { %1693 = shalt.err (!%p1690_p1)
}
0x17b9   :  { %1222 = dma.vmem_to_hbm [thread:$0]  %s1220_s13, 128, %s1996_s8, [#allocation4]  }
0x17ba   :  { %1708 = dma.done.wait [#allocation4], 128  }
0x17bb   :  { %1709 = vsyncadd [#allocation4], 4294967168 }
0x17bc   :  { %1226 = vsyncpa [#allocation3], 1 }
0x17bd   :  { %1227 = vsyncpa [#allocation6], 1 }
0x17be   :  { %1228 = vsyncpa [#allocation9], 1 }
0x17bf   :  { %1229 = vsyncpa [#allocation4], 1 }

</bundles_post_ra>
